<compile_context>
chip_gen: v7x
topology: tpu7x:2x2x1
jax: 0.10.0
libtpu: 0.0.40
codegen_flags: <defaults>
</compile_context>

<pallas_src>
import functools

import jax
import jax.numpy as jnp
from jax.experimental import pallas as pl
from jax.experimental.pallas import tpu as pltpu


# ---------------------------------------------------------------------------
# Kernel: whole forward pass (trunk MLP + fused [state|reward] head) for one
# batch block, in transposed [features, batch] layout.
# ---------------------------------------------------------------------------
def single_step_kernel(s_ref, a_ref,
                       w1s_ref, w1a_ref, b1_ref,
                       w2_ref, b2_ref,
                       wh_ref, bh_ref,
                       out_ref, *, mxu_dtype):
    s = s_ref[...].astype(mxu_dtype)                      # (state_dim, bb)
    a = a_ref[...].astype(mxu_dtype)                      # (action_dim, bb)

    # trunk layer 1: Linear(concat(s, a)) + ReLU; concat folded into split weights.
    h = (jnp.dot(w1s_ref[...].astype(mxu_dtype), s, preferred_element_type=jnp.float32)
         + jnp.dot(w1a_ref[...].astype(mxu_dtype), a, preferred_element_type=jnp.float32)
         + b1_ref[...])                                   # (hidden, bb), f32
    h = jnp.maximum(h, 0.0)

    # trunk layer 2: Linear + ReLU
    h = jnp.dot(w2_ref[...].astype(mxu_dtype), h.astype(mxu_dtype),
                preferred_element_type=jnp.float32) + b2_ref[...]
    h = jnp.maximum(h, 0.0)

    # fused heads: one matmul producing [sp ; r] along the sublane axis.
    out = jnp.dot(wh_ref[...].astype(mxu_dtype), h.astype(mxu_dtype),
                  preferred_element_type=jnp.float32) + bh_ref[...]
    out_ref[...] = out.astype(out_ref.dtype)              # final_act = identity


# ---------------------------------------------------------------------------
# Batch-tile selection (batch lives on the 128-lane axis).
# ---------------------------------------------------------------------------
def _choose_block_b(B, cap=2048):
    """Returns (block_b, B_pad). block_b is a multiple of 128 (or the full batch for
    small non-aligned B); B_pad >= B is the (possibly zero-padded) batch extent."""
    if B % 128 != 0:
        if B <= 1024:
            return B, B                       # full-dim block is legal and tiny
        B_pad = ((B + 127) // 128) * 128      # pad instead of one huge VMEM block
    else:
        B_pad = B
    best = 128
    d = 256
    while d <= min(B_pad, cap):
        if B_pad % d == 0:
            best = d
        d += 128
    # Prefer >=2 grid steps so both v7x TensorCores get work on the parallel axis.
    if best == B_pad and B_pad >= 256 and (B_pad // 2) % 128 == 0:
        best = B_pad // 2
    return best, B_pad


# ---------------------------------------------------------------------------
# Wrapper
# ---------------------------------------------------------------------------
def single_step_forward(state, action, params, *, block_b=None, mxu_dtype=jnp.float32):
    """Pallas forward. `params` must contain the pre-transposed / pre-fused weights
    from make_kernel_params: w1s_t, w1a_t, b1_t, w2_t, b2_t, wh_t, bh_t."""
    B, state_dim = state.shape
    action_dim = action.shape[1]
    hidden_dim = params["w2_t"].shape[0]
    head_dim = params["wh_t"].shape[0]        # state_dim + 1

    # Transposed layout: batch -> lanes, features -> sublanes (layout plumbing only).
    s_t = state.T                              # (state_dim, B)
    a_t = action.T                             # (action_dim, B)

    if block_b is None:
        block_b, B_pad = _choose_block_b(B)
    else:
        assert B % block_b == 0
        B_pad = B
    if B_pad > B:
        s_t = jnp.pad(s_t, ((0, 0), (0, B_pad - B)))
        a_t = jnp.pad(a_t, ((0, 0), (0, B_pad - B)))
    grid = (B_pad // block_b,)

    batch_map = lambda i: (0, i)
    const_map = lambda i: (0, 0)

    w1s_t, w1a_t, b1_t = params["w1s_t"], params["w1a_t"], params["b1_t"]
    w2_t, b2_t = params["w2_t"], params["b2_t"]
    wh_t, bh_t = params["wh_t"], params["bh_t"]
    weights = (w1s_t, w1a_t, b1_t, w2_t, b2_t, wh_t, bh_t)

    in_specs = [
        pl.BlockSpec((state_dim, block_b), batch_map),
        pl.BlockSpec((action_dim, block_b), batch_map),
    ] + [pl.BlockSpec(w.shape, const_map) for w in weights]
    out_specs = pl.BlockSpec((head_dim, block_b), batch_map)

    # Advisory cost hint for XLA's scheduler around this small custom call.
    flops = 2 * B_pad * ((state_dim + action_dim) * hidden_dim
                         + hidden_dim * hidden_dim + hidden_dim * head_dim)
    weight_bytes = sum(int(w.size) * w.dtype.itemsize for w in weights)
    bytes_accessed = B_pad * (state_dim + action_dim + head_dim) * 4 + weight_bytes
    cost = pl.CostEstimate(flops=int(flops), transcendentals=0,
                           bytes_accessed=int(bytes_accessed))

    out = pl.pallas_call(
        functools.partial(single_step_kernel, mxu_dtype=mxu_dtype),
        grid=grid,
        out_shape=jax.ShapeDtypeStruct((head_dim, B_pad), jnp.float32),
        in_specs=in_specs,
        out_specs=out_specs,
        compiler_params=pltpu.CompilerParams(dimension_semantics=("parallel",)),
        cost_estimate=cost,
    )(s_t, a_t, *weights)

    # Slice the fused lane-dense slab back into (sp, r) in [batch, features] layout.
    sp = out[:state_dim, :B].T                 # (B, state_dim)
    r = out[state_dim:, :B].T                  # (B, 1)
    return sp, r


# ---------------------------------------------------------------------------
# Params
# ---------------------------------------------------------------------------
def init_linear(key, fan_in, fan_out):
    """PyTorch-style Linear init: U(-1/sqrt(fan_in), 1/sqrt(fan_in)).
    W is [in, out]; b is [1, out]."""
    kw, kb = jax.random.split(key)
    bound = 1.0 / jnp.sqrt(jnp.float32(fan_in))
    w = jax.random.uniform(kw, (fan_in, fan_out), jnp.float32, -bound, bound)
    b = jax.random.uniform(kb, (1, fan_out), jnp.float32, -bound, bound)
    return w, b


def make_kernel_params(raw, state_dim):
    """One-time param transform: split W1 (fused concat), fuse the two heads, and
    transpose everything for the [features, batch] kernel layout."""
    w1 = raw["w1"]                                            # (state+action, hidden)
    return dict(
        w1s_t=w1[:state_dim, :].T,                            # (hidden, state_dim)
        w1a_t=w1[state_dim:, :].T,                            # (hidden, action_dim)
        b1_t=raw["b1"].T,                                     # (hidden, 1)
        w2_t=raw["w2"].T,                                     # (hidden, hidden)
        b2_t=raw["b2"].T,                                     # (hidden, 1)
        wh_t=jnp.concatenate([raw["ws"], raw["wr"]], axis=1).T,  # (state_dim+1, hidden)
        bh_t=jnp.concatenate([raw["bs"], raw["br"]], axis=1).T,  # (state_dim+1, 1)
    )


def reference_forward(state, action, raw):
    """Plain-JAX reference mirroring the PyTorch module semantics (unfused params)."""
    sa = jnp.concatenate([state, action], axis=-1)
    h = jnp.maximum(sa @ raw["w1"] + raw["b1"], 0.0)
    h = jnp.maximum(h @ raw["w2"] + raw["b2"], 0.0)
    sp = h @ raw["ws"] + raw["bs"]            # final_act = identity
    r = h @ raw["wr"] + raw["br"]
    return sp, r


# TODO(synk): the module's loss() (MSE + host-side metrics dict) is a training-time
# path and is not ported to a kernel here.

if __name__ == "__main__":
    B = 2
    state_dim = 8
    action_dim = 4
    hidden_dim = 32

    key = jax.random.PRNGKey(0)
    ks = jax.random.split(key, 6)

    w1, b1 = init_linear(ks[0], state_dim + action_dim, hidden_dim)
    w2, b2 = init_linear(ks[1], hidden_dim, hidden_dim)
    ws, bs = init_linear(ks[2], hidden_dim, state_dim)
    wr, br = init_linear(ks[3], hidden_dim, 1)
    raw_params = dict(w1=w1, b1=b1, w2=w2, b2=b2, ws=ws, bs=bs, wr=wr, br=br)
    params = make_kernel_params(raw_params, state_dim)   # done once, not per call

    state = jax.random.normal(ks[4], (B, state_dim), jnp.float32)
    action = jax.random.normal(ks[5], (B, action_dim), jnp.float32)

    sp, r = single_step_forward(state, action, params)   # f32 MXU (demo accuracy)
    sp, r = jax.block_until_ready((sp, r))

    sp_ref, r_ref = reference_forward(state, action, raw_params)
    assert sp.shape == (B, state_dim) and r.shape == (B, 1)
    assert jnp.allclose(sp, sp_ref, atol=1e-5, rtol=1e-5)
    assert jnp.allclose(r, r_ref, atol=1e-5, rtol=1e-5)

    print("KERNEL_OK")
</pallas_src>

<mosaic_0001>
module attributes {stable_mosaic.version = 11 : i64} {
  func.func @single_step_kernel(%arg0: i32, %arg1: memref<8x2xf32, #tpu.memory_space<vmem>>, %arg2: memref<4x2xf32, #tpu.memory_space<vmem>>, %arg3: memref<32x8xf32, #tpu.memory_space<vmem>>, %arg4: memref<32x4xf32, #tpu.memory_space<vmem>>, %arg5: memref<32x1xf32, #tpu.memory_space<vmem>>, %arg6: memref<32x32xf32, #tpu.memory_space<vmem>>, %arg7: memref<32x1xf32, #tpu.memory_space<vmem>>, %arg8: memref<9x32xf32, #tpu.memory_space<vmem>>, %arg9: memref<9x1xf32, #tpu.memory_space<vmem>>, %arg10: memref<9x2xf32, #tpu.memory_space<vmem>>) attributes {dimension_semantics = [#tpu.dimension_semantics<parallel>], iteration_bounds = array<i64: 1>, scalar_prefetch = 0 : i64, scratch_operands = 0 : i64, tpu.core_type = #tpu.core_type<tc>, window_params = [{transform_indices = @transform_0, window_bounds = array<i64: 8, 2>}, {transform_indices = @transform_1, window_bounds = array<i64: 4, 2>}, {pipeline_mode = #tpu.pipeline_mode<synchronous>, transform_indices = @transform_2, window_bounds = array<i64: 32, 8>}, {pipeline_mode = #tpu.pipeline_mode<synchronous>, transform_indices = @transform_3, window_bounds = array<i64: 32, 4>}, {pipeline_mode = #tpu.pipeline_mode<synchronous>, transform_indices = @transform_4, window_bounds = array<i64: 32, 1>}, {pipeline_mode = #tpu.pipeline_mode<synchronous>, transform_indices = @transform_5, window_bounds = array<i64: 32, 32>}, {pipeline_mode = #tpu.pipeline_mode<synchronous>, transform_indices = @transform_6, window_bounds = array<i64: 32, 1>}, {pipeline_mode = #tpu.pipeline_mode<synchronous>, transform_indices = @transform_7, window_bounds = array<i64: 9, 32>}, {pipeline_mode = #tpu.pipeline_mode<synchronous>, transform_indices = @transform_8, window_bounds = array<i64: 9, 1>}, {transform_indices = @transform_9, window_bounds = array<i64: 9, 2>}]} {
    %c0 = arith.constant 0 : index
    %c0_0 = arith.constant 0 : index
    %0 = vector.load %arg1[%c0, %c0_0] : memref<8x2xf32, #tpu.memory_space<vmem>>, vector<8x2xf32>
    %c0_1 = arith.constant 0 : index
    %c0_2 = arith.constant 0 : index
    %1 = vector.load %arg2[%c0_1, %c0_2] : memref<4x2xf32, #tpu.memory_space<vmem>>, vector<4x2xf32>
    %c0_3 = arith.constant 0 : index
    %c0_4 = arith.constant 0 : index
    %2 = vector.load %arg3[%c0_3, %c0_4] : memref<32x8xf32, #tpu.memory_space<vmem>>, vector<32x8xf32>
    %cst = arith.constant dense<0.000000e+00> : vector<32x2xf32>
    %3 = tpu.matmul %2, %0, %cst {dimension_numbers = #tpu.dot_dimension_numbers<[1], [0], [0], [1], [0, 0, 1, 1], [], []>} : vector<32x8xf32>, vector<8x2xf32>, vector<32x2xf32> -> vector<32x2xf32>
    %c0_5 = arith.constant 0 : index
    %c0_6 = arith.constant 0 : index
    %4 = vector.load %arg4[%c0_5, %c0_6] : memref<32x4xf32, #tpu.memory_space<vmem>>, vector<32x4xf32>
    %cst_7 = arith.constant dense<0.000000e+00> : vector<32x2xf32>
    %5 = tpu.matmul %4, %1, %cst_7 {dimension_numbers = #tpu.dot_dimension_numbers<[1], [0], [0], [1], [0, 0, 1, 1], [], []>} : vector<32x4xf32>, vector<4x2xf32>, vector<32x2xf32> -> vector<32x2xf32>
    %6 = arith.addf %3, %5 : vector<32x2xf32>
    %c0_8 = arith.constant 0 : index
    %c0_9 = arith.constant 0 : index
    %7 = vector.load %arg5[%c0_8, %c0_9] : memref<32x1xf32, #tpu.memory_space<vmem>>, vector<32x1xf32>
    %8 = vector.broadcast %7 : vector<32x1xf32> to vector<32x2xf32>
    %9 = arith.addf %6, %8 : vector<32x2xf32>
    %cst_10 = arith.constant 0.000000e+00 : f32
    %10 = vector.broadcast %cst_10 : f32 to vector<32x2xf32>
    %11 = arith.maximumf %9, %10 : vector<32x2xf32>
    %c0_11 = arith.constant 0 : index
    %c0_12 = arith.constant 0 : index
    %12 = vector.load %arg6[%c0_11, %c0_12] : memref<32x32xf32, #tpu.memory_space<vmem>>, vector<32x32xf32>
    %cst_13 = arith.constant dense<0.000000e+00> : vector<32x2xf32>
    %13 = tpu.matmul %12, %11, %cst_13 {dimension_numbers = #tpu.dot_dimension_numbers<[1], [0], [0], [1], [0, 0, 1, 1], [], []>} : vector<32x32xf32>, vector<32x2xf32>, vector<32x2xf32> -> vector<32x2xf32>
    %c0_14 = arith.constant 0 : index
    %c0_15 = arith.constant 0 : index
    %14 = vector.load %arg7[%c0_14, %c0_15] : memref<32x1xf32, #tpu.memory_space<vmem>>, vector<32x1xf32>
    %15 = vector.broadcast %14 : vector<32x1xf32> to vector<32x2xf32>
    %16 = arith.addf %13, %15 : vector<32x2xf32>
    %cst_16 = arith.constant 0.000000e+00 : f32
    %17 = vector.broadcast %cst_16 : f32 to vector<32x2xf32>
    %18 = arith.maximumf %16, %17 : vector<32x2xf32>
    %c0_17 = arith.constant 0 : index
    %c0_18 = arith.constant 0 : index
    %19 = vector.load %arg8[%c0_17, %c0_18] : memref<9x32xf32, #tpu.memory_space<vmem>>, vector<9x32xf32>
    %cst_19 = arith.constant dense<0.000000e+00> : vector<9x2xf32>
    %20 = tpu.matmul %19, %18, %cst_19 {dimension_numbers = #tpu.dot_dimension_numbers<[1], [0], [0], [1], [0, 0, 1, 1], [], []>} : vector<9x32xf32>, vector<32x2xf32>, vector<9x2xf32> -> vector<9x2xf32>
    %c0_20 = arith.constant 0 : index
    %c0_21 = arith.constant 0 : index
    %21 = vector.load %arg9[%c0_20, %c0_21] : memref<9x1xf32, #tpu.memory_space<vmem>>, vector<9x1xf32>
    %22 = vector.broadcast %21 : vector<9x1xf32> to vector<9x2xf32>
    %23 = arith.addf %20, %22 : vector<9x2xf32>
    %c0_22 = arith.constant 0 : index
    %c0_23 = arith.constant 0 : index
    %24 = vector.load %arg10[%c0_22, %c0_23] : memref<9x2xf32, #tpu.memory_space<vmem>>, vector<9x2xf32>
    tpu.vector_store %arg10[%c0_22, %c0_23], %23 {strides = array<i32>} : memref<9x2xf32, #tpu.memory_space<vmem>>, vector<9x2xf32>,
    return
  }
  func.func @transform_0(%arg0: i32) -> (i32, i32) {
    %c0_i32 = arith.constant 0 : i32
    %c0_i32_0 = arith.constant 0 : i32
    return %c0_i32, %arg0 : i32, i32
  }
  func.func @transform_1(%arg0: i32) -> (i32, i32) {
    %c0_i32 = arith.constant 0 : i32
    %c0_i32_0 = arith.constant 0 : i32
    return %c0_i32, %arg0 : i32, i32
  }
  func.func @transform_2(%arg0: i32) -> (i32, i32) {
    %c0_i32 = arith.constant 0 : i32
    %c0_i32_0 = arith.constant 0 : i32
    %c0_i32_1 = arith.constant 0 : i32
    return %c0_i32, %c0_i32_0 : i32, i32
  }
  func.func @transform_3(%arg0: i32) -> (i32, i32) {
    %c0_i32 = arith.constant 0 : i32
    %c0_i32_0 = arith.constant 0 : i32
    %c0_i32_1 = arith.constant 0 : i32
    return %c0_i32, %c0_i32_0 : i32, i32
  }
  func.func @transform_4(%arg0: i32) -> (i32, i32) {
    %c0_i32 = arith.constant 0 : i32
    %c0_i32_0 = arith.constant 0 : i32
    %c0_i32_1 = arith.constant 0 : i32
    return %c0_i32, %c0_i32_0 : i32, i32
  }
  func.func @transform_5(%arg0: i32) -> (i32, i32) {
    %c0_i32 = arith.constant 0 : i32
    %c0_i32_0 = arith.constant 0 : i32
    %c0_i32_1 = arith.constant 0 : i32
    return %c0_i32, %c0_i32_0 : i32, i32
  }
  func.func @transform_6(%arg0: i32) -> (i32, i32) {
    %c0_i32 = arith.constant 0 : i32
    %c0_i32_0 = arith.constant 0 : i32
    %c0_i32_1 = arith.constant 0 : i32
    return %c0_i32, %c0_i32_0 : i32, i32
  }
  func.func @transform_7(%arg0: i32) -> (i32, i32) {
    %c0_i32 = arith.constant 0 : i32
    %c0_i32_0 = arith.constant 0 : i32
    %c0_i32_1 = arith.constant 0 : i32
    return %c0_i32, %c0_i32_0 : i32, i32
  }
  func.func @transform_8(%arg0: i32) -> (i32, i32) {
    %c0_i32 = arith.constant 0 : i32
    %c0_i32_0 = arith.constant 0 : i32
    %c0_i32_1 = arith.constant 0 : i32
    return %c0_i32, %c0_i32_0 : i32, i32
  }
  func.func @transform_9(%arg0: i32) -> (i32, i32) {
    %c0_i32 = arith.constant 0 : i32
    %c0_i32_0 = arith.constant 0 : i32
    return %c0_i32, %arg0 : i32, i32
  }
}

</mosaic_0001>

<bundles_post_ra>
// kernel: tpu_custom_call.1
= control target key start
LH: loop header
LB: loop body
LE: loop exit
PB: predicated region body
PF: predicated region fallthrough
CT: control target
= control target key end

     0   :  { %vm55_vm0 = vcmask 1043456   ;;  %vm42_vm1 = vcmask 31744   ;;  %v610_v3 = vmov 0   ;;  %vm144_vm2 = vcmask 64512   ;;  %s759_s1 = inlined_call_operand.vmem [shape: f32[4,2], index: 1, kind: input, shape index: {}]   ;;  %s760_s3 = inlined_call_operand.vmem [shape: f32[32,4], index: 3, kind: input, shape index: {}]   ;;  %s761_s0 = inlined_call_operand.vmem [shape: f32[8,2], index: 0, kind: input, shape index: {}]   ;;  %s762_s4 = inlined_call_operand.vmem [shape: f32[32,1], index: 4, kind: input, shape index: {}]   ;;  %s763_s2 = inlined_call_operand.vmem [shape: f32[32,8], index: 2, kind: input, shape index: {}]   ;;  %s764_s6 = inlined_call_operand.vmem [shape: f32[32,1], index: 6, kind: input, shape index: {}]   ;;  %s765_s8 = inlined_call_operand.vmem [shape: f32[9,1], index: 8, kind: input, shape index: {}]   ;;  %s766_s5 = inlined_call_operand.vmem [shape: f32[32,32], index: 5, kind: input, shape index: {}]   ;;  %s767_s7 = inlined_call_operand.vmem [shape: f32[9,32], index: 7, kind: input, shape index: {}]   ;;  %s768_s9 = inlined_call_operand.vmem [shape: f32[9,2], index: 9, kind: output, shape index: {}]  }
   0x1   :  { %v33_v0 = vld [vmem:[%s759_s1] sm:$0xf]  ;;  %v39_v2 = vld [vmem:[%s760_s3 + $0x8] sm:$0xff]  ;;  %608 = vset.pattern.permute.xlu0 %v610_v3  ;;  %609 = vset.pattern.permute.xlu1 %v610_v3  ;;  %v40_v5 = vld [vmem:[%s760_s3 + $0x10] sm:$0xff]  ;;  %vm302_vm3 = vcmask 261120   ;;  %vm501_vm4 = vcmask 8192  }
   0x2   :  { %v38_v1 = vld [vmem:[%s760_s3] sm:$0xff]  ;;  %546 = vmatprep.subr.msk.mxu0 %vm55_vm0, %v33_v0  ;;  %v244_v7 = vld [vmem:[%s762_s4 + $0x10] sm:$0xff]  ;;  %v41_v8 = vld [vmem:[%s760_s3 + $0x18] sm:$0xff]  ;;  %vm499_vm5 = vcmask 15360  }
   0x3   :  { %548 = vmatprep.mubr.msk.f32.mxu0 %vm42_vm1, %v38_v1  ;;  %v32_v4 = vld [vmem:[%s761_s0] sm:$0xff]  ;;  %547 = vmatpush3.msk.msra.mxu0 %vm55_vm0, %v33_v0  ;;  %v243_v10 = vld [vmem:[%s762_s4 + $0x8] sm:$0xff]  ;;  %v245_v11 = vld [vmem:[%s762_s4 + $0x18] sm:$0xff] }
   0x4   :  { %549 = vmatmul.mubr.msk.f32.vlgmr.msra.gmra.mrb[0].mxu0 %vm42_vm1, %v39_v2  ;;  %554 = vmatprep.subr.mxu0 %v32_v4  ;;  %v242_v6 = vld [vmem:[%s762_s4] sm:$0xff]  ;;  %v35_v12 = vld [vmem:[%s763_s2 + $0x8] sm:$0xff]  ;;  %v36_v13 = vld [vmem:[%s763_s2 + $0x10] sm:$0xff] }
   0x5   :  { %555 = vmatpush3.msra.mxu0 %v32_v4  ;;  %551 = vmatprep.mubr.msk.f32.mxu0 %vm42_vm1, %v40_v5  ;;  %v34_v9 = vld [vmem:[%s763_s2] sm:$0xff]  ;;  %v279_v15 = vld [vmem:[%s764_s6 + $0x8] sm:$0xff]  ;;  %v37_v16 = vld [vmem:[%s763_s2 + $0x18] sm:$0xff] }
   0x6   :  { %248 = vperm.xlu0 %608, %v242_v6   ;;  %258 = vperm.xlu1 %609, %v244_v7   ;;  %v278_v14 = vld [vmem:[%s764_s6] sm:$0xff]  ;;  %v280_v17 = vld [vmem:[%s764_s6 + $0x10] sm:$0xff]  ;;  %v281_v18 = vld [vmem:[%s764_s6 + $0x18] sm:$0xff] }
   0x7   :  { %v406_v19 = vld [vmem:[%s765_s8] sm:$0xff]  ;;  %v407_v20 = vld [vmem:[%s765_s8 + $0x8] sm:$0x1]  ;;  %v276_v41 = vld [vmem:[%s766_s5 + $0x10] sm:$0xff] }
   0x8   :  { %552 = vmatmul.mubr.msk.f32.gmra.mrb[2].mxu0 %vm42_vm1, %v41_v8  ;;  %v274_v21 = vld [vmem:[%s766_s5] sm:$0xff]  ;;  %v275_v40 = vld [vmem:[%s766_s5 + $0x8] sm:$0xff]  ;;  %v277_v42 = vld [vmem:[%s766_s5 + $0x18] sm:$0xff] }
   0x9   :  { %556 = vmatprep.mubr.msk.f32.mxu0 %vm144_vm2, %v34_v9  ;;  %570 = vmatprep.mubr.msk.f32.mxu1 %vm302_vm3, %v274_v21  ;;  %v404_v43 = vld [vmem:[%s767_s7] sm:$0xff]  ;;  %v405_v62 = vld [vmem:[%s767_s7 + $0x8] sm:$0x1] }
   0xa   :  { %253 = vperm.xlu0 %608, %v243_v10   ;;  %263 = vperm.xlu1 %609, %v245_v11  }
   0xc   :  { %557 = vmatmul.mubr.msk.f32.vlgmr.msra.gmra.mrb[0].mxu0 %vm144_vm2, %v35_v12 }
   0xd   :  { %559 = vmatprep.mubr.msk.f32.mxu0 %vm144_vm2, %v36_v13 }
   0xe   :  { %284 = vperm.xlu0 %608, %v278_v14   ;;  %289 = vperm.xlu1 %609, %v279_v15  }
  0x10   :  { %560 = vmatmul.mubr.msk.f32.gmra.mrb[2].mxu0 %vm144_vm2, %v37_v16 }
  0x12   :  { %294 = vperm.xlu0 %608, %v280_v17   ;;  %299 = vperm.xlu1 %609, %v281_v18  }
  0x16   :  { %410 = vperm.xlu0 %608, %v406_v19   ;;  %415 = vperm.xlu1 %609, %v407_v20  }
  0x85   :  { %v249_v22 = vpop.permute.xlu0 %248  ;;  %v259_v23 = vpop.permute.xlu1 %258 }
  0x89   :  { %v254_v24 = vpop.permute.xlu0 %253  ;;  %v264_v30 = vpop.permute.xlu1 %263 }
  0x8d   :  { %v290_v44 = vpop.permute.xlu1 %289  ;;  %v285_v45 = vpop.permute.xlu0 %284 }
  0x91   :  { %v300_v51 = vpop.permute.xlu1 %299  ;;  %v295_v54 = vpop.permute.xlu0 %294 }
  0x95   :  { %v416_v63 = vpop.permute.xlu1 %415  ;;  %v411_v1 = vpop.permute.xlu0 %410 }
  0xdf   :  { %v558_v25 = vpop.f32.mrb[0].mxu0 }
  0xe0   :  { %v267_v26 = vadd.f32 %v558_v25, %v254_v24  ;;  %v223_v27 = vpop.f32.mrb[1].mxu0 }
  0xe1   :  { %v266_v28 = vadd.f32 %v249_v22, %v223_v27 }
  0xe2   :  { %v271_v29 = vmax.f32 %v267_v26, 0.0 }
  0xe3   :  { %v270_v31 = vmax.f32 %v266_v28, 0.0  ;;  %v561_v32 = vpop.f32.mrb[2].mxu0 }
  0xe4   :  { %v269_v33 = vadd.f32 %v561_v32, %v264_v30  ;;  %v233_v34 = vpop.f32.mrb[3].mxu0 }
  0xe5   :  { %v268_v35 = vadd.f32 %v259_v23, %v233_v34  ;;  %v587_v36 = vpack.c.bf16 %v271_v29, %v270_v31 }
  0xe6   :  { %v273_v37 = vmax.f32 %v269_v33, 0.0 }
  0xe7   :  { %v272_v38 = vmax.f32 %v268_v35, 0.0  ;;  %588 = vmatprep.subr.bf16.mxu1 %v587_v36 }
  0xe8   :  { %590 = vmatpush3.bf16.msra.mxu1 %v587_v36 }
  0xe9   :  { %v591_v39 = vpack.c.bf16 %v273_v37, %v272_v38 }
  0xeb   :  { %592 = vmatprep.subr.bf16.mxu1 %v591_v39 }
  0xec   :  { %594 = vmatpush3.bf16.msra.mxu1 %v591_v39 }
  0xef   :  { %571 = vmatmul.mubr.msk.f32.vlgmr.msra.gmra.mrb[0].mxu1 %vm302_vm3, %v275_v40 }
  0xf0   :  { %573 = vmatprep.mubr.msk.f32.mxu1 %vm302_vm3, %v276_v41 }
  0xf3   :  { %574 = vmatmul.mubr.msk.f32.gmra.mrb[2].mxu1 %vm302_vm3, %v277_v42 }
  0xf4   :  { %584 = vmatprep.mubr.msk.f32.mxu1 %vm302_vm3, %v404_v43 }
 0x1c2   :  { %v572_v46 = vpop.f32.mrb[0].mxu1 }
 0x1c3   :  { %v387_v47 = vadd.f32 %v572_v46, %v290_v44  ;;  %v381_v48 = vpop.f32.mrb[1].mxu1 }
 0x1c4   :  { %v382_v49 = vadd.f32 %v381_v48, %v285_v45 }
 0x1c5   :  { %v401_v50 = vmax.f32 %v387_v47, 0.0 }
 0x1c6   :  { %v400_v52 = vmax.f32 %v382_v49, 0.0  ;;  %v575_v53 = vpop.f32.mrb[2].mxu1 }
 0x1c7   :  { %v397_v55 = vadd.f32 %v575_v53, %v300_v51  ;;  %v391_v56 = vpop.f32.mrb[3].mxu1 }
 0x1c8   :  { %v595_v57 = vpack.c.bf16 %v401_v50, %v400_v52  ;;  %v392_v58 = vadd.f32 %v391_v56, %v295_v54 }
 0x1c9   :  { %v403_v59 = vmax.f32 %v397_v55, 0.0 }
 0x1ca   :  { %v402_v60 = vmax.f32 %v392_v58, 0.0  ;;  %596 = vmatprep.subr.bf16.mxu1 %v595_v57 }
 0x1cb   :  { %598 = vmatpush3.bf16.msra.mxu1 %v595_v57 }
 0x1cc   :  { %v599_v61 = vpack.c.bf16 %v403_v59, %v402_v60 }
 0x1ce   :  { %600 = vmatprep.subr.bf16.mxu1 %v599_v61 }
 0x1cf   :  { %602 = vmatpush3.bf16.msra.mxu1 %v599_v61 }
 0x1d2   :  { %585 = vmatmul.mubr.msk.f32.vlgmr.msra.gmra.mrb[4].mxu1 %vm302_vm3, %v405_v62 }
 0x2a5   :  { %v586_v0 = vpop.f32.mrb[4].mxu1 }
 0x2a6   :  { %v496_v2 = vadd.f32 %v586_v0, %v416_v63  ;;  %v490_v3 = vpop.f32.mrb[5].mxu1 }
 0x2a7   :  { %v491_v4 = vadd.f32 %v490_v3, %v411_v1 }
 0x2a8   :  { %502 = vst.msk [vmem:[%s768_s9 + $0x8] sm:$0x1] %vm501_vm4, %v496_v2 }
 0x2a9   :  { %500 = vst.msk [vmem:[%s768_s9] sm:$0xff] %vm499_vm5, %v491_v4 }

</bundles_post_ra>
